<compile_context>
chip_gen: v6e
topology: v6e:2x2x1
jax: 0.10.0
libtpu: 0.0.40
codegen_flags: <defaults>
</compile_context>

<pallas_src>
import math

import jax
import jax.numpy as jnp
from jax.experimental import pallas as pl
from jax.experimental.pallas import tpu as pltpu


def _round_up(x, m):
    return ((x + m - 1) // m) * m


def _linear_kernel(x_ref, w_ref, b_ref, o_ref):
    # One (tm, n_features) tile of token rows times the resident pre-transposed
    # weight (n_features, embed_dim): a single MXU push with f32 accumulation,
    # bias add in f32, one cast on the way out. embed_dim is the lane axis, so
    # stores are lane-dense when embed_dim is a multiple of 128.
    acc = jnp.dot(x_ref[...], w_ref[...], preferred_element_type=jnp.float32)
    o_ref[...] = (acc + b_ref[...].astype(jnp.float32)).astype(o_ref.dtype)


def init_embedding_projection_params(weight, bias, *, param_dtype=None):
    """One-time conversion of nn.Linear params into the kernel's layout.

    weight: (embed_dim, n_features) torch/nn.Linear (out, in) layout
    bias:   (embed_dim,)
    Returns (weight_t, bias) with weight_t of shape (n_features, embed_dim).
    Call this once at parameter-load time so the per-forward path never pays
    the HBM read+write of a transpose (or a per-call dtype cast).
    """
    w_t = weight.T
    if param_dtype is not None:
        w_t = w_t.astype(param_dtype)
    return w_t, bias


def embedding_projection_forward(x, weight_t, bias, *, block_rows=None,
                                 use_bf16=False, min_grid_steps=1,
                                 out_dtype=None):
    """EmbeddingProjection.forward: out = x @ W^T + b.

    x:        [..., n_features]
    weight_t: [n_features, embed_dim]   (pre-transposed once via init_*)
    bias:     [embed_dim]
    min_grid_steps: set to 2 on v7x so both TensorCores get work.
    returns:  [..., embed_dim]
    """
    *lead, n_features = x.shape
    k_dim, embed_dim = weight_t.shape
    assert k_dim == n_features, "weight_t must be (n_features, embed_dim)"

    rows = math.prod(lead) if lead else 1

    compute_dtype = jnp.bfloat16 if use_bf16 else x.dtype
    if out_dtype is None:
        out_dtype = jnp.bfloat16 if use_bf16 else x.dtype

    # Collapse leading dims into one tall token-row axis (fills MXU sublanes).
    x2 = x.reshape(rows, n_features)
    if x2.dtype != compute_dtype:
        x2 = x2.astype(compute_dtype)   # ideally the caller already holds bf16
    w = weight_t if weight_t.dtype == compute_dtype else weight_t.astype(compute_dtype)
    b2 = bias.reshape(1, embed_dim)

    align = 16 if compute_dtype == jnp.bfloat16 else 8  # sublane packing

    if block_rows is None:
        # VMEM budget: double-buffered x/out tiles + (worst case double-buffered)
        # resident W^T + bias, kept under ~24 MiB so we stay below the 32 MiB
        # default scoped VMEM limit on v5e/v6e/v7x without raising
        # vmem_limit_bytes.
        in_item = jnp.dtype(compute_dtype).itemsize
        out_item = jnp.dtype(out_dtype).itemsize
        resident = (2 * n_features * embed_dim * in_item
                    + 2 * embed_dim * jnp.dtype(bias.dtype).itemsize)
        per_row = 2 * (n_features * in_item + embed_dim * out_item)
        budget = 24 * 1024 * 1024
        block_rows = (budget - resident) // max(per_row, 1)
        block_rows = int(max(align, min(block_rows, 4096)))

    # Balanced row tiles: tail padding is < `align` rows; at least
    # `min_grid_steps` blocks so e.g. v7x's second TensorCore gets work.
    num_blocks = max(pl.cdiv(rows, block_rows), min_grid_steps)
    num_blocks = min(num_blocks, max(1, rows // align))
    tm = _round_up(pl.cdiv(rows, num_blocks), align)
    grid = (pl.cdiv(rows, tm),)

    # TODO(synk): if a Mosaic VMEM report on v7x shows the grid-invariant W^T
    # double-buffered and embed_dim is large, switch its spec to
    # pipeline_mode=pl.Buffered(1) (or a scratch filled once) to reclaim VMEM.
    out = pl.pallas_call(
        _linear_kernel,
        out_shape=jax.ShapeDtypeStruct((rows, embed_dim), out_dtype),
        grid_spec=pltpu.PrefetchScalarGridSpec(
            num_scalar_prefetch=0,
            grid=grid,
            in_specs=[
                pl.BlockSpec((tm, n_features), lambda i: (i, 0)),          # x row tile
                pl.BlockSpec((n_features, embed_dim), lambda i: (0, 0)),   # W^T, grid-invariant
                pl.BlockSpec((1, embed_dim), lambda i: (0, 0)),            # bias, grid-invariant
            ],
            out_specs=pl.BlockSpec((tm, embed_dim), lambda i: (i, 0)),
        ),
        compiler_params=pltpu.CompilerParams(
            dimension_semantics=("parallel",)),
    )(x2, w, b2)

    return out.reshape(*lead, embed_dim)


if __name__ == "__main__":
    # Small shapes consistent with the module: [batch, time_frames, mel_features].
    N_FEATURES, EMBED_DIM = 64, 128

    key = jax.random.PRNGKey(0)
    kx, kw, kb = jax.random.split(key, 3)

    scale = 1.0 / jnp.sqrt(jnp.float32(N_FEATURES))
    weight = jax.random.normal(kw, (EMBED_DIM, N_FEATURES), dtype=jnp.float32) * scale
    bias = jax.random.normal(kb, (EMBED_DIM,), dtype=jnp.float32) * scale

    # One-time param prep (replaces the per-call weight.T).
    w_t, b = init_embedding_projection_params(weight, bias)

    # Case A: rows not a multiple of the tile (2*23=46) and >=2 grid steps
    # (v7x two-TensorCore path) -> exercises the ragged/masked last block.
    B, T = 2, 23
    x_a = jax.random.normal(kx, (B, T, N_FEATURES), dtype=jnp.float32)
    out_a = jax.block_until_ready(
        embedding_projection_forward(x_a, w_t, b, min_grid_steps=2))
    assert out_a.shape == (B, T, EMBED_DIM)
    ref_a = x_a @ weight.T + bias
    assert jnp.allclose(out_a, ref_a, atol=1e-4, rtol=1e-4), (
        f"case A max abs diff {jnp.max(jnp.abs(out_a - ref_a))}")

    # Case B: exact tiling, default single-step path.
    B, T = 2, 24
    x_b = jax.random.normal(kx, (B, T, N_FEATURES), dtype=jnp.float32)
    out_b = jax.block_until_ready(embedding_projection_forward(x_b, w_t, b))
    assert out_b.shape == (B, T, EMBED_DIM)
    ref_b = x_b @ weight.T + bias
    assert jnp.allclose(out_b, ref_b, atol=1e-4, rtol=1e-4), (
        f"case B max abs diff {jnp.max(jnp.abs(out_b - ref_b))}")

    print("KERNEL_OK")
</pallas_src>

<mosaic_0001>
module attributes {stable_mosaic.version = 11 : i64} {
  func.func @_linear_kernel(%arg0: i32, %arg1: memref<24x64xf32, #tpu.memory_space<vmem>>, %arg2: memref<64x128xf32, #tpu.memory_space<vmem>>, %arg3: memref<1x128xf32, #tpu.memory_space<vmem>>, %arg4: memref<24x128xf32, #tpu.memory_space<vmem>>) attributes {dimension_semantics = [#tpu.dimension_semantics<parallel>], iteration_bounds = array<i64: 2>, scalar_prefetch = 0 : i64, scratch_operands = 0 : i64, tpu.core_type = #tpu.core_type<tc>, window_params = [{transform_indices = @transform_0, window_bounds = array<i64: 24, 64>}, {pipeline_mode = #tpu.pipeline_mode<synchronous>, transform_indices = @transform_1, window_bounds = array<i64: 64, 128>}, {pipeline_mode = #tpu.pipeline_mode<synchronous>, transform_indices = @transform_2, window_bounds = array<i64: 1, 128>}, {transform_indices = @transform_3, window_bounds = array<i64: 24, 128>}]} {
    %c0 = arith.constant 0 : index
    %c0_0 = arith.constant 0 : index
    %0 = vector.load %arg1[%c0, %c0_0] : memref<24x64xf32, #tpu.memory_space<vmem>>, vector<24x64xf32>
    %c0_1 = arith.constant 0 : index
    %c0_2 = arith.constant 0 : index
    %1 = vector.load %arg2[%c0_1, %c0_2] : memref<64x128xf32, #tpu.memory_space<vmem>>, vector<64x128xf32>
    %cst = arith.constant dense<0.000000e+00> : vector<24x128xf32>
    %2 = tpu.matmul %0, %1, %cst {dimension_numbers = #tpu.dot_dimension_numbers<[1], [0], [0], [1], [0, 0, 1, 1], [], []>} : vector<24x64xf32>, vector<64x128xf32>, vector<24x128xf32> -> vector<24x128xf32>
    %c0_3 = arith.constant 0 : index
    %c0_4 = arith.constant 0 : index
    %3 = vector.load %arg3[%c0_3, %c0_4] : memref<1x128xf32, #tpu.memory_space<vmem>>, vector<1x128xf32>
    %4 = vector.broadcast %3 : vector<1x128xf32> to vector<24x128xf32>
    %5 = arith.addf %2, %4 : vector<24x128xf32>
    %c0_5 = arith.constant 0 : index
    %c0_6 = arith.constant 0 : index
    %6 = vector.load %arg4[%c0_5, %c0_6] : memref<24x128xf32, #tpu.memory_space<vmem>>, vector<24x128xf32>
    tpu.vector_store %arg4[%c0_5, %c0_6], %5 {strides = array<i32>} : memref<24x128xf32, #tpu.memory_space<vmem>>, vector<24x128xf32>,
    return
  }
  func.func @transform_0(%arg0: i32) -> (i32, i32) {
    %c0_i32 = arith.constant 0 : i32
    %c0_i32_0 = arith.constant 0 : i32
    return %arg0, %c0_i32 : i32, i32
  }
  func.func @transform_1(%arg0: i32) -> (i32, i32) {
    %c0_i32 = arith.constant 0 : i32
    %c0_i32_0 = arith.constant 0 : i32
    %c0_i32_1 = arith.constant 0 : i32
    return %c0_i32, %c0_i32_0 : i32, i32
  }
  func.func @transform_2(%arg0: i32) -> (i32, i32) {
    %c0_i32 = arith.constant 0 : i32
    %c0_i32_0 = arith.constant 0 : i32
    %c0_i32_1 = arith.constant 0 : i32
    return %c0_i32, %c0_i32_0 : i32, i32
  }
  func.func @transform_3(%arg0: i32) -> (i32, i32) {
    %c0_i32 = arith.constant 0 : i32
    %c0_i32_0 = arith.constant 0 : i32
    return %arg0, %c0_i32 : i32, i32
  }
}

</mosaic_0001>

<bundles_post_ra>
// kernel: tpu_custom_call.1
= control target key start
LH: loop header
LB: loop body
LE: loop exit
PB: predicated region body
PF: predicated region fallthrough
CT: control target
= control target key end

     0   :  { %8 = vsyncpa [#allocation3], 0  ;;  %s898_s0 = inlined_call_operand.hbm [shape: f32[46,64], index: 0, kind: input, shape index: {}]   ;;  %s899_s1 = inlined_call_operand.hbm [shape: f32[64,128], index: 1, kind: input, shape index: {}]   ;;  %s900_s2 = inlined_call_operand.vmem [shape: f32[1,128], index: 2, kind: input, shape index: {}]   ;;  %s901_s3 = inlined_call_operand.hbm [shape: f32[46,128], index: 3, kind: output, shape index: {}]  }
   0x1   :  { %10 = vsyncpa [#allocation3 + $0x1], 0 }
   0x2   :  { %11 = vsyncpa [#allocation6], 0 }
   0x3   :  { %12 = vsyncpa [#allocation4], 0 }
   0x4   :  { %14 = vsyncpa [#allocation4 + $0x1], 0  ;;  %s700_s12 = smov 0   ;;  %s702_s13 = smov 0  }
   0x5   :  { %s704_s14 = smov 0   ;;  %s706_s15 = smov 0  }
   0x6 LB: > { %s721_s16 = sadd.s32 4294967295, %s669_s15   ;;  %s414_s17 = sadd.s32 4294967294, %s669_s15   ;;  %s669_s15 = sphi %s706_s15, %s923_s15   ;;  %s665_s14 = sphi %s704_s14, %s922_s14   ;;  %s661_s13 = sphi %s702_s13, %s921_s13   ;;  %s657_s12 = sphi %s700_s12, %s920_s12  }
   0x7   : > { %p40_p0 = scmp.ne.s32.totalorder %s661_s13, %s657_s12  ;;  %p902_p1 = scmp.eq.s32.totalorder %s721_s16, 0 }
   0x8   : > { %p112_p3 = scmp.eq.s32.totalorder %s414_s17, 1  ;;  %p415_p5 = scmp.ge.s32.totalorder %s669_s15, 1 }
   0x9   : > { %p730_p4 = por %p902_p1, %p40_p0  ;;  %p119_p7 = scmp.lt.s32.totalorder %s669_s15, 3 }
   0xa   : > { %p735_p6 = por %p112_p3, %p40_p0  ;;  %s671_s21 = smov [#allocation5]  }
   0xb   : > { %s906_s18 = scalar_select %p730_p4, 1, 0 }
   0xc   : > { %s907_s19 = scalar_select %p735_p6, 1, 0 }
   0xd   : > { %p740_p8 = pnand %p415_p5, %p119_p7  ;;  %s131_s22 = sshll.u32 %s671_s21, 4  ;;  %s132_s22 = int_to_ptr.vmem [resolvable:$true] %s131_s22 }
   0xe   : > { %s754_s24 = sadd.s32 1, %s669_s15   ;;  %s27_s25 = sadd.s32 1, %s665_s14 }
   0xf   : > { %s908_s20 = scalar_select %p740_p8, 1, 0 }
  0x10   : > { %p492_p9 = pneg %p740_p8  ;;  %s24_s26 = ssub.s32 %s669_s15, %s754_s24 }
  0x11   : > { %s558_s27 = scalar_lea.vmem %s132_s22, 1024  ;;  %p566_p5 = scmp.lt.s32.totalorder %s132_s22, %s132_s22 }
  0x12   : > { %p749_p11 = pnand %p492_p9, %p902_p1  ;;  %p559_p13 = scmp.ne.s32.totalorder %s132_s22, %s558_s27 }
  0x13   : > { %p567_p7 = scmp.lt.s32.totalorder %s558_s27, %s558_s27 }
  0x14   : > { %p549_p12 = pneg %p749_p11 }
  0x15   : > { %p568_p10 = por %p567_p7, %p566_p5 }
  0x16   : > { %p561_p0 = pnand %p559_p13, %p549_p12 }
  0x18   : > { %p562_p3 = pneg %p561_p0 }
  0x1a   : > { %p569_p2 = pnand %p568_p10, %p562_p3 }
  0x1c   : > { %572 = shalt.err (!%p569_p2)
}
  0x1d   : > { %s672_s28 = smov 128   ;;  %s673_s29 = smov 8  }
  0x1e   : > { %495 = dma.hbm_to_vmem [thread:$0]  (!%p749_p11), %s899_s1, 1024, %s132_s22, [#allocation6], %s672_s28, %s672_s28, %s673_s29  }
  0x1f   : > { %p25_p2 = scmp.eq.s32.totalorder %s24_s26, 0  ;;  %p34_p9 = scmp.ne.s32.totalorder %s665_s14, %s661_s13 }
  0x20   : > { %p35_p10 = scmp.eq.s32.totalorder %s669_s15, 0  ;;  %p505_p12 = scmp.lt.s32.totalorder %s669_s15, 2 }
  0x21   : > { %s774_s5 = scalar_select %p25_p2, %s665_s14, %s27_s25  }
  0x22   : > { %p36_p13 = por %p35_p10, %p34_p9  ;;  %p910_p0 = scmp.eq.s32.totalorder %s721_s16, 1 }
  0x23   : > { %s148_s7 = sand.u32 1, %s665_s14   ;;  %s428_s8 = smul.u32 384, %s669_s15 }
  0x24   : > { %p778_p3 = por %p910_p0, %p34_p9  ;;  %s482_s9 = smul.u32 24, %s148_s7 }
  0x25   : > { %p784_p5 = pnand %p505_p12, %p36_p13  ;;  %s791_s21 = scalar_lea.hbm %s898_s0, %s428_s8 }
  0x26   : > { %s911_s6 = scalar_select %p778_p3, 1, 0 }
  0x27   : > { %s152_s22 = scalar_lea.vmem [#allocation2], %s482_s9  ;;  %s795_s25 = scalar_lea.sflag [#allocation3], %s148_s7 }
  0x28   : > { %s159_s23 = sshll.u32 %s152_s22, 4  ;;  %s573_s26 = scalar_lea.hbm %s791_s21, 384  ;;  %s793_s23 = int_to_ptr.vmem [resolvable:$true] %s159_s23 }
  0x29   : > { %p574_p11 = scmp.ne.s32.totalorder %s791_s21, %s573_s26  ;;  %p575_p7 = pneg %p784_p5 }
  0x2a   : > { %s578_s4 = scalar_lea.hbm %s898_s0, 768  ;;  %p579_p10 = scmp.lt.s32.totalorder %s791_s21, %s898_s0 }
  0x2b   : > { %p576_p2 = pnand %p575_p7, %p574_p11  ;;  %p580_p12 = scmp.lt.s32.totalorder %s578_s4, %s573_s26 }
  0x2d   : > { %p577_p9 = pneg %p576_p2  ;;  %p581_p13 = por %p580_p12, %p579_p10 }
  0x2f   : > { %p582_p0 = pnand %p581_p13, %p577_p9 }
  0x31   : > { %585 = shalt.err (!%p582_p0)
}
  0x32   : > { %s586_s7 = scalar_lea.vmem %s793_s23, 384  ;;  %s674_s9 = smov [#allocation2]  }
  0x33   : > { %p587_p1 = scmp.ne.s32.totalorder %s793_s23, %s586_s7  ;;  %s591_s17 = sshll.u32 %s674_s9, 4  ;;  %s592_s17 = int_to_ptr.vmem [resolvable:$false] %s591_s17 }
  0x34   : > { %s593_s22 = scalar_lea.vmem %s592_s17, 768  ;;  %p594_p2 = scmp.lt.s32.totalorder %s793_s23, %s592_s17 }
  0x35   : > { %p589_p6 = pnand %p587_p1, %p575_p7  ;;  %p595_p3 = scmp.lt.s32.totalorder %s593_s22, %s586_s7 }
  0x37   : > { %p590_p11 = pneg %p589_p6  ;;  %p596_p4 = por %p595_p3, %p594_p2 }
  0x39   : > { %p597_p8 = pnand %p596_p4, %p590_p11 }
  0x3b   : > { %600 = shalt.err (!%p597_p8)
}
  0x3c   : > { %499 = dma.hbm_to_vmem [thread:$0]  (!%p784_p5), %s791_s21, 384, %s793_s23, %s795_s25, %s672_s28, %s672_s28, %s673_s29  }
  0x3d   : > { %p913_p1 = scmp.ne.s32.totalorder %s908_s20, 0 }
  0x3e   : > { %s822_s26 = sand.u32 (!%p913_p1), 1, %s661_s13   ;;  %p914_p4 = scmp.ne.s32.totalorder (!%p913_p1), %s906_s18, 0 }
  0x3f   : > { %171 = sbr.rel (%p913_p1) target bundleno = 303 (0x12f), region = 32  ;;  %s174_s30 = scalar_lea.sflag (!%p913_p1), [#allocation3], %s822_s26 }
  0x40   : > { %s483_s27 = smul.u32 (!%p913_p1), 24, %s822_s26 }
  0x42   : > { %s828_s10 = scalar_lea.vmem (!%p913_p1), [#allocation2], %s483_s27 }
  0x44   : > { %644 = dma.done.wait (%p914_p4), %s174_s30, 384  }
  0x45   : > { %646 = vsyncadd (%p914_p4), %s174_s30, 4294966912  ;;  %p915_p6 = scmp.eq.s32.totalorder %s721_s16, 0 }
  0x47   : > { %648 = dma.done.wait (%p915_p6), [#allocation6], 1024   ;;  %p916_p8 = pmov %p915_p6 }
  0x48   : > { %v675_v0 = vmov 0.0   ;;  %vm676_vm0 = vmmov 0   ;;  %v216_v1 = vld [vmem:[#allocation5 + $0x38] sm:$0xff]  ;;  %v215_v2 = vld [vmem:[#allocation5 + $0x30] sm:$0xff]  ;;  %v214_v3 = vld [vmem:[#allocation5 + $0x28] sm:$0xff]  ;;  %vm224_vm1 = vcmask 523264  }
  0x49   : > { %650 = vsyncadd (%p916_p8), [#allocation6], 4294966272  ;;  %466 = vmatprep.subr.mxu1 %v675_v0  ;;  %441 = vmatprep.subr.mxu0 %v675_v0  ;;  %v213_v4 = vld [vmem:[#allocation5 + $0x20] sm:$0xff]  ;;  %v212_v5 = vld [vmem:[#allocation5 + $0x18] sm:$0xff]  ;;  %s203_s28 = scalar_lea.vmem [#allocation7], %s483_s27  ;;  %s429_s21 = smul.u32 384, %s721_s16 }
  0x4a   : > { %460 = vmatprep.mubr.msk.f32.mxu1 %vm676_vm0, %v675_v0  ;;  %457 = vmatprep.mubr.msk.f32.mxu0 %vm676_vm0, %v675_v0  ;;  %v211_v6 = vld [vmem:[#allocation5 + $0x10] sm:$0xff]  ;;  %v210_v7 = vld [vmem:[#allocation5 + $0x8] sm:$0xff]  ;;  %v209_v8 = vld [vmem:[#allocation5] sm:$0xff]  ;;  %s331_s29 = sshll.u32 %s203_s28, 4  ;;  %s318_s16 = scalar_lea.sflag [#allocation4], %s822_s26  ;;  %s850_s29 = int_to_ptr.vmem [resolvable:$true] %s331_s29 }
  0x4b   : > { %474 = vmatpush3.msra.mxu1 %v216_v1  ;;  %442 = vmatpush3.msra.mxu0 %v216_v1  ;;  %v207_v9 = vld [vmem:[%s828_s10 + $0x8] sm:$0xff]  ;;  %v206_v10 = vld [vmem:[%s828_s10] sm:$0xff]  ;;  %v208_v11 = vld [vmem:[%s828_s10 + $0x10] sm:$0xff]  ;;  %s855_s4 = scalar_lea.hbm %s901_s3, %s429_s21  ;;  %s601_s8 = scalar_lea.vmem %s850_s29, 384 }
  0x4c   : > { %467 = vmatprep.subr.mxu1 %v675_v0  ;;  %443 = vmatprep.subr.mxu0 %v675_v0  ;;  %v421_v12 = vld [vmem:[%s900_s2] ss:$0 sm:$0xff]  ;;  %p602_p3 = scmp.ne.s32.totalorder %s850_s29, %s601_s8  ;;  %p917_p5 = scmp.ne.s32.totalorder %s911_s6, 0 }
  0x4d   : > { %475 = vmatpush3.msra.mxu1 %v215_v2  ;;  %444 = vmatpush3.msra.mxu0 %v215_v2  ;;  %s677_s11 = smov [#allocation7]  }
  0x4e   : > { %468 = vmatprep.subr.mxu1 %v675_v0  ;;  %445 = vmatprep.subr.mxu0 %v675_v0  ;;  %p603_p7 = pnand %p602_p3, %p917_p5  ;;  %s605_s7 = sshll.u32 %s677_s11, 4  ;;  %s606_s7 = int_to_ptr.vmem [resolvable:$false] %s605_s7 }
  0x4f   : > { %476 = vmatpush3.msra.mxu1 %v214_v3  ;;  %446 = vmatpush3.msra.mxu0 %v214_v3  ;;  %s607_s9 = scalar_lea.vmem %s606_s7, 768  ;;  %p608_p10 = scmp.lt.s32.totalorder %s850_s29, %s606_s7 }
  0x50   : > { %469 = vmatprep.subr.mxu1 %v675_v0  ;;  %447 = vmatprep.subr.mxu0 %v675_v0  ;;  %p604_p9 = pneg %p603_p7  ;;  %p609_p12 = scmp.lt.s32.totalorder %s607_s9, %s601_s8 }
  0x51   : > { %477 = vmatpush3.msra.mxu1 %v213_v4  ;;  %448 = vmatpush3.msra.mxu0 %v213_v4 }
  0x52   : > { %470 = vmatprep.subr.mxu1 %v675_v0  ;;  %449 = vmatprep.subr.mxu0 %v675_v0  ;;  %p610_p13 = por %p609_p12, %p608_p10 }
  0x53   : > { %478 = vmatpush3.msra.mxu1 %v212_v5  ;;  %450 = vmatpush3.msra.mxu0 %v212_v5 }
  0x54   : > { %471 = vmatprep.subr.mxu1 %v675_v0  ;;  %451 = vmatprep.subr.mxu0 %v675_v0  ;;  %p611_p0 = pnand %p610_p13, %p604_p9 }
  0x55   : > { %479 = vmatpush3.msra.mxu1 %v211_v6  ;;  %452 = vmatpush3.msra.mxu0 %v211_v6 }
  0x56   : > { %472 = vmatprep.subr.mxu1 %v675_v0  ;;  %453 = vmatprep.subr.mxu0 %v675_v0 }
  0x57   : > { %480 = vmatpush3.msra.mxu1 %v210_v7  ;;  %454 = vmatpush3.msra.mxu0 %v210_v7 }
  0x58   : > { %473 = vmatprep.subr.mxu1 %v675_v0  ;;  %455 = vmatprep.subr.mxu0 %v675_v0 }
  0x59   : > { %481 = vmatpush3.msra.mxu1 %v209_v8  ;;  %456 = vmatpush3.msra.mxu0 %v209_v8 }
  0x5a   : > { %461 = vmatmul.mubr.msk.f32.vlgmr.msra.gmra.mxu1 %vm224_vm1, %v207_v9  ;;  %458 = vmatmul.mubr.msk.f32.vlgmr.msra.gmra.mxu0 %vm224_vm1, %v206_v10 }
  0x5b   : > { %463 = vmatprep.mubr.msk.f32.mxu1 %vm676_vm0, %v675_v0 }
  0x5e   : > { %464 = vmatmul.mubr.msk.f32.gmra.mxu1 %vm224_vm1, %v208_v11 }
 0x11a   : > { %v305_v13 = vpop.f32.mrf.mxu1  ;;  %v300_v14 = vpop.f32.mrf.mxu0 }
 0x11b   : > { %v306_v15 = vadd.f32 %v421_v12, %v305_v13  ;;  %v301_v16 = vadd.f32 %v421_v12, %v300_v14 }
 0x11c   : > { %v462_v17 = vpop.f32.mrf.mxu1  ;;  %v459_v18 = vpop.f32.mrf.mxu0 }
 0x11d   : > { %315 = vst [vmem:[%s203_s28 + $0x8] sm:$0xff] %v306_v15  ;;  %314 = vst [vmem:[%s203_s28] sm:$0xff] %v301_v16 }
 0x11e   : > { %v310_v19 = vpop.f32.mrf.mxu1 }
 0x11f   : > { %v311_v20 = vadd.f32 %v421_v12, %v310_v19 }
 0x120   : > { %v465_v21 = vpop.f32.mrf.mxu1 }
 0x121   : > { %316 = vst [vmem:[%s203_s28 + $0x10] sm:$0xff] %v311_v20 }
 0x122   : > { %614 = shalt.err (!%p611_p0)
}
 0x123   : > { %s615_s17 = scalar_lea.hbm %s855_s4, 384  ;;  %s619_s30 = scalar_lea.hbm %s901_s3, 768 }
 0x124   : > { %p616_p11 = scmp.ne.s32.totalorder %s855_s4, %s615_s17  ;;  %p620_p4 = scmp.lt.s32.totalorder %s855_s4, %s901_s3 }
 0x125   : > { %p621_p6 = scmp.lt.s32.totalorder %s619_s30, %s615_s17 }
 0x126   : > { %p617_p2 = pnand %p616_p11, %p917_p5 }
 0x127   : > { %p622_p8 = por %p621_p6, %p620_p4 }
 0x128   : > { %p618_p1 = pneg %p617_p2 }
 0x12a   : > { %p623_p3 = pnand %p622_p8, %p618_p1 }
 0x12c   : > { %626 = shalt.err (!%p623_p3)
}
 0x12d   : > { %s678_s20 = smov 128   ;;  %s679_s28 = smov 8  }
 0x12e   : > { %490 = dma.vmem_to_hbm [thread:$0]  (%p917_p5), %s850_s29, 384, %s855_s4, %s318_s16, %s678_s20, %s678_s20, %s679_s28  }
 0x12f PF: > { %s346_s21 = sand.u32 1, %s657_s12   ;;  %p918_p7 = scmp.ne.s32.totalorder %s907_s19, 0 }
 0x130   : > { %p919_p9 = scmp.ge.s32.totalorder %s669_s15, 2  ;;  %s347_s23 = scalar_lea.sflag [#allocation4], %s346_s21 }
 0x132   : > { %p501_p10 = pnand %p919_p9, %p918_p7 }
 0x134   : > { %p502_p12 = pneg %p501_p10 }
 0x136   : > { %652 = dma.done.wait (%p502_p12), %s347_s23, 384  }
 0x137   : > { %654 = vsyncadd (%p502_p12), %s347_s23, 4294966912  ;;  %p17_p13 = scmp.ge.s32.totalorder %s754_s24, 4   ;;  %s920_s12 = smov %s661_s13 }
 0x138   : > { %s921_s13 = smov %s665_s14  ;;  %s922_s14 = smov %s774_s5 }
 0x139   : > { %s923_s15 = smov %s754_s24  ;;  %19 = sbr.rel (!%p17_p13) target bundleno = 6 (0x6), region = 81 }
 0x13e   :  { %352 = vsyncpa [#allocation3], 1 }
 0x13f   :  { %354 = vsyncpa [#allocation3 + $0x1], 1 }
 0x140   :  { %355 = vsyncpa [#allocation6], 1 }
 0x141   :  { %356 = vsyncpa [#allocation4], 1 }
 0x142   :  { %358 = vsyncpa [#allocation4 + $0x1], 1 }

</bundles_post_ra>
